<compile_context>
chip_gen: v7x
topology: tpu7x:2x2x1
jax: 0.10.0
libtpu: 0.0.40
codegen_flags: <defaults>
</compile_context>

<pallas_src>
import functools

import numpy as np
import jax
import jax.numpy as jnp
from jax.experimental import pallas as pl
from jax.experimental.pallas import tpu as pltpu

F32 = jnp.float32
BF16 = jnp.bfloat16

LOC_PAD = 128  # location features (8 wide) are lane-padded to 128 (zero cols)


def _round_up(x, m):
    return ((x + m - 1) // m) * m


def _pad_rows(x, n_pad):
    pad = n_pad - x.shape[0]
    if pad > 0:
        x = jnp.pad(x, ((0, pad), (0, 0)))
    return x


def _select_row_tile(n):
    """Largest row tile that keeps the grid >=2 steps (v7x megacore) when possible."""
    n = max(int(n), 1)
    if n >= 1024:
        return 512
    if n >= 512:
        return 256
    return 128


# ----------------------------------------------------------------------------
# Main fused MLP kernel (per row tile):
#   location branch : Linear(8->64)+ReLU -> Linear(64->512)+ReLU   (8 padded to 128)
#   visual branch   : Linear(2048->1024)+ReLU -> Linear(1024->512)+ReLU
#   pair_fc1        : Linear(cat(loc,vis)=1024, 512)+ReLU          (split weights)
#   pair_fc2        : Linear(cat(pair512, from_instance)=1024, 512)+ReLU
#   pair_fc3        : Linear(512,1)+Sigmoid  (VPU multiply + lane reduction)
# ----------------------------------------------------------------------------
def _pair_head_kernel(loc_ref, vis_ref, inst_ref,
                      wl1, bl1, wl2, bl2,
                      wv1, bv1, wv2, bv2,
                      wp1a, wp1b, bp1,
                      wp2a, wp2b, bp2,
                      wp3r, bp3,
                      feat512_ref, pred_ref):
    relu = lambda x: jnp.maximum(x, 0.0)
    dot = functools.partial(jnp.dot, preferred_element_type=jnp.float32)

    # location branch (bf16 matmuls, f32 accumulation + bias)
    loc_h = relu(dot(loc_ref[...], wl1[...]) + bl1[...])
    loc_feat = relu(dot(loc_h.astype(BF16), wl2[...]) + bl2[...])

    # visual branch
    # TODO(synk): wv1 (2048x1024, ~57% of MACs) could run int8 on v5e/v6e (2x MXU
    # rate) -- not portable to v7x (fp8-only MXU), so kept bf16 here.
    vis_h = relu(dot(vis_ref[...], wv1[...]) + bv1[...])
    vis_feat = relu(dot(vis_h.astype(BF16), wv2[...]) + bv2[...])

    # pair_fc1 on concat([location_feature, visual_feature], dim=1)
    pair512_mix = relu(dot(loc_feat.astype(BF16), wp1a[...])
                       + dot(vis_feat.astype(BF16), wp1b[...])
                       + bp1[...])

    # pair_fc2 on concat([pair_features_512_mix, from_instance_512_mix], dim=1)
    feat512 = relu(dot(pair512_mix.astype(BF16), wp2a[...])
                   + dot(inst_ref[...], wp2b[...])
                   + bp2[...])
    feat512_ref[...] = feat512

    # pair_fc3 + sigmoid: VPU multiply + XLU lane reduction (no 512x1 MXU matmul).
    logit = jnp.sum(feat512 * wp3r[...], axis=-1, keepdims=True) + bp3[...]
    pred = jax.nn.sigmoid(logit)
    # Lane-dense store (128 wide); wrapper slices column 0.
    pred_ref[...] = jnp.broadcast_to(pred, pred_ref.shape)


def pair_head_mlp(loc, vis, from_inst, kp):
    n = loc.shape[0]
    tile = _select_row_tile(n)
    n_pad = _round_up(max(n, 1), tile)

    # Lane-dense location input: pad the 8 feature cols to 128 zero cols.
    loc_p = jnp.pad(loc, ((0, n_pad - n), (0, LOC_PAD - loc.shape[1]))).astype(BF16)
    vis_p = _pad_rows(vis, n_pad).astype(BF16)
    inst_p = _pad_rows(from_inst, n_pad).astype(BF16)   # no-op cast: GCN already emits bf16

    weight_args = (kp["wl1"], kp["bl1"], kp["wl2"], kp["bl2"],
                   kp["wv1"], kp["bv1"], kp["wv2"], kp["bv2"],
                   kp["wp1a"], kp["wp1b"], kp["bp1"],
                   kp["wp2a"], kp["wp2b"], kp["bp2"],
                   kp["wp3r"], kp["bp3"])

    def rows(cols):
        return pl.BlockSpec((tile, cols), lambda i: (i, 0))

    def resident(a):
        # Grid-invariant weights/biases: single-buffered (no double-buffer VMEM waste).
        return pl.BlockSpec(a.shape, lambda i: (0, 0), pipeline_mode=pl.Buffered(1))

    in_specs = [rows(LOC_PAD), rows(2048), rows(512)] + [resident(w) for w in weight_args]
    out_specs = (pl.BlockSpec((tile, 512), lambda i: (i, 0)),
                 pl.BlockSpec((tile, 128), lambda i: (i, 0)))

    weight_bytes = sum(int(np.prod(w.shape)) * w.dtype.itemsize for w in weight_args)
    macs_per_row = (LOC_PAD * 64 + 64 * 512 + 2048 * 1024 + 1024 * 512
                    + 1024 * 512 + 1024 * 512 + 512)
    bytes_accessed = (n_pad * (LOC_PAD + 2048 + 512) * 2   # bf16 row inputs
                      + weight_bytes                       # resident weights/biases
                      + n_pad * (512 + 128) * 4)           # f32 outputs
    cost = pl.CostEstimate(flops=2 * n_pad * macs_per_row,
                           transcendentals=n_pad,
                           bytes_accessed=bytes_accessed)

    # VMEM budget: double-buffered row tiles (in/out) + single-buffered weights
    # + slack for f32 intermediates / compiler internal scratch.
    vmem_bytes = (2 * tile * (LOC_PAD + 2048 + 512) * 2     # bf16 inputs, 2 buffers
                  + 2 * tile * (512 + 128) * 4              # f32 outputs, 2 buffers
                  + weight_bytes
                  + (12 << 20))
    vmem_limit = int(min(_round_up(vmem_bytes, 1 << 20), 48 << 20))

    feat512, pred = pl.pallas_call(
        _pair_head_kernel,
        out_shape=(jax.ShapeDtypeStruct((n_pad, 512), F32),
                   jax.ShapeDtypeStruct((n_pad, 128), F32)),
        grid=(n_pad // tile,),
        in_specs=in_specs,
        out_specs=out_specs,
        compiler_params=pltpu.CompilerParams(
            dimension_semantics=("parallel",),
            vmem_limit_bytes=vmem_limit),
        cost_estimate=cost,
    )(loc_p, vis_p, inst_p, *weight_args)

    return feat512[:n], pred[:n, 0]


# ----------------------------------------------------------------------------
# OtherGCNLayer(512, 256), batched over images in a single pallas_call.
# TODO(synk): exact OtherGCNLayer definition is not provided in the reference
# source; implemented as  relu(fc2(relu(fc1(attention @ features))))  with
# fc1: 512->256, fc2: 256->512 (output dim 512 is required by pair_fc2's 1024
# input).
# ----------------------------------------------------------------------------
def _gcn_kernel(attn_ref, feat_ref, wg1, bg1, wg2, bg2, out_ref):
    relu = lambda x: jnp.maximum(x, 0.0)
    dot = functools.partial(jnp.dot, preferred_element_type=jnp.float32)
    x = dot(attn_ref[...], feat_ref[...])                          # [P, 512] f32
    h = relu(dot(x.astype(BF16), wg1[...]) + bg1[...])             # [P, 256]
    out = relu(dot(h.astype(BF16), wg2[...]) + bg2[...])           # [P, 512]
    out_ref[...] = out.astype(out_ref.dtype)                       # bf16 writeback


def other_gcn_layers_batched(relation_instance_features, attentions, kp):
    n_images = len(attentions)
    p_pad = _round_up(max(a.shape[0] for a in attentions), 16)     # bf16 (16,128) sublane tile
    i_pad = _round_up(max(f.shape[0] for f in relation_instance_features), 128)

    attn_b = jnp.stack([
        jnp.pad(a, ((0, p_pad - a.shape[0]), (0, i_pad - a.shape[1])))
        for a in attentions]).astype(BF16)                          # [B, P, I]
    feat_b = jnp.stack([
        jnp.pad(f, ((0, i_pad - f.shape[0]), (0, 0)))
        for f in relation_instance_features]).astype(BF16)          # [B, I, 512]

    def resident(a):
        return pl.BlockSpec(a.shape, lambda b: (0, 0), pipeline_mode=pl.Buffered(1))

    out = pl.pallas_call(
        _gcn_kernel,
        # bf16 output: pair_fc2 consumes it in bf16 anyway (numerics-neutral),
        # halves the writeback and removes the wrapper-side cast pass.
        out_shape=jax.ShapeDtypeStruct((n_images, p_pad, 512), BF16),
        grid=(n_images,),
        in_specs=[
            pl.BlockSpec((pl.Squeezed(), p_pad, i_pad), lambda b: (b, 0, 0)),
            pl.BlockSpec((pl.Squeezed(), i_pad, 512), lambda b: (b, 0, 0)),
            resident(kp["wg1"]), resident(kp["bg1"]),
            resident(kp["wg2"]), resident(kp["bg2"]),
        ],
        out_specs=pl.BlockSpec((pl.Squeezed(), p_pad, 512), lambda b: (b, 0, 0)),
        compiler_params=pltpu.CompilerParams(
            dimension_semantics=("parallel",),
            vmem_limit_bytes=16 * 1024 * 1024),
    )(attn_b, feat_b, kp["wg1"], kp["bg1"], kp["wg2"], kp["bg2"])
    return out  # [B, p_pad, 512] bf16


# ----------------------------------------------------------------------------
# Parameter preparation for the kernels:
#   * weights cast to bf16 (halves resident VMEM + HBM traffic)
#   * wl1 zero-row padded to (128, 64) to match the lane-padded location input
#   * wp1 / wp2 split into 512x512 halves (no in-kernel Ref slicing)
#   * wp3 transposed to a (1,512) row for the VPU dot-product head (kept f32)
#   * biases kept f32 (added after f32 accumulation)
# ----------------------------------------------------------------------------
def _prepare_params(p):
    wl1 = jnp.pad(p["wl1"], ((0, LOC_PAD - p["wl1"].shape[0]), (0, 0)))
    return {
        "wl1": wl1.astype(BF16), "bl1": p["bl1"],
        "wl2": p["wl2"].astype(BF16), "bl2": p["bl2"],
        "wv1": p["wv1"].astype(BF16), "bv1": p["bv1"],
        "wv2": p["wv2"].astype(BF16), "bv2": p["bv2"],
        "wp1a": p["wp1"][:512].astype(BF16),
        "wp1b": p["wp1"][512:].astype(BF16), "bp1": p["bp1"],
        "wp2a": p["wp2"][:512].astype(BF16),
        "wp2b": p["wp2"][512:].astype(BF16), "bp2": p["bp2"],
        "wp3r": p["wp3"].T.astype(F32), "bp3": p["bp3"],
        "wg1": p["wg1"].astype(BF16), "bg1": p["bg1"],
        "wg2": p["wg2"].astype(BF16), "bg2": p["bg2"],
    }


# ----------------------------------------------------------------------------
# Loss / metrics glue (matches PairHead20.binary_focal_loss + compute_pair_result)
# ----------------------------------------------------------------------------
def binary_focal_loss(pred, gt, pos_gamma=1.0, neg_gamma=2.0):
    num_1 = jnp.sum(gt) * 1.0
    num_0 = gt.shape[0] - num_1
    eps = 1e-5
    pred = jnp.clip(pred, eps, 1.0 - eps)
    ce_1 = gt * -jnp.log(pred)
    ce_0 = (1.0 - gt) * -jnp.log(1.0 - pred)
    fl_1 = jnp.power(1.0 - pred, pos_gamma) * ce_1
    fl_0 = jnp.power(pred, neg_gamma) * ce_0
    fl_1_avg = jnp.where(num_1 == 0, jnp.sum(fl_1), jnp.sum(fl_1) / jnp.maximum(num_1, 1e-12))
    fl_0_avg = jnp.where(num_0 == 0, jnp.sum(fl_0), jnp.sum(fl_0) / jnp.maximum(num_0, 1e-12))
    return fl_1_avg, fl_0_avg


def compute_pair_result(pred_mix, feat512_mix, pair_instances, losses, metrics, training):
    nums = [int(p["num_pairs"]) for p in pair_instances]
    splits = [int(s) for s in np.cumsum(nums)[:-1]]
    pair_interest_preds = jnp.split(pred_mix, splits)
    pair_features_512s = jnp.split(feat512_mix, splits)
    if training:
        gts = [p["pred_pair_interest"].astype(F32) for p in pair_instances]
        gt_mix = jnp.concatenate(gts)
        losses["pair_pos_loss"], losses["pair_neg_loss"] = binary_focal_loss(pred_mix, gt_mix)
        # Host-side top-k precision/recall metric: single device->host transfer.
        pred_host = np.asarray(jax.device_get(pred_mix))
        gt_host = np.asarray(jax.device_get(gt_mix))
        pred_per = np.split(pred_host, splits)
        gt_per = np.split(gt_host, splits)
        tps = ps = gs = 0.0
        for pr, gt in zip(pred_per, gt_per):
            k = min(int(gt.sum()), pr.shape[0])
            if k > 0:
                thresh = np.sort(pr)[::-1][k - 1]
                pred_pred = (pr >= thresh).astype(np.float32)
                tp = float((pred_pred * gt).sum())
                p_ = float(pred_pred.sum())
            else:
                tp, p_ = 0.0, 0.0
            tps += tp
            ps += p_
            gs += float(gt.sum())
        metrics["pair_tp"] = tps
        metrics["pair_p"] = ps
        metrics["pair_g"] = gs
    return pair_interest_preds, pair_features_512s, losses, metrics


# ----------------------------------------------------------------------------
# PairHead20.forward equivalent
# ----------------------------------------------------------------------------
def pair_head20_forward(pair_features, pair_instances, pred_instances,
                        relation_instance_features, params, training=True):
    del pred_instances  # indexed but never used inside the torch forward
    losses, metrics = {}, {}
    kp = _prepare_params(params)

    nums = [int(p["num_pairs"]) for p in pair_instances]
    pair_locations_mix = jnp.concatenate(
        [p["pred_pair_locations"] for p in pair_instances], axis=0)
    pair_features_mix = jnp.concatenate(pair_features, axis=0)
    # NOTE: subject/object class tensors are computed in the torch forward but
    # never consumed afterwards (dead code) -- omitted here.

    # Batched OtherGCNLayer first: its compute overlaps the MLP kernel's
    # resident-weight HBM reads (cross-call prologue hiding).
    attentions = [p["pred_pair_instance_relate_matrix"] for p in pair_instances]
    gcn_out = other_gcn_layers_batched(relation_instance_features, attentions, kp)
    from_inst_mix = jnp.concatenate(
        [gcn_out[i, :nums[i], :] for i in range(len(nums))], axis=0)

    feat512_mix, pred_mix = pair_head_mlp(
        pair_locations_mix, pair_features_mix, from_inst_mix, kp)

    return compute_pair_result(pred_mix, feat512_mix, pair_instances,
                               losses, metrics, training)


# ----------------------------------------------------------------------------
# Deterministic parameter init (shapes from PairHead20.__init__)
# ----------------------------------------------------------------------------
def init_params(key):
    shapes = {
        "wl1": (8, 64), "wl2": (64, 512),
        "wv1": (2048, 1024), "wv2": (1024, 512),
        "wp1": (1024, 512), "wp2": (1024, 512), "wp3": (512, 1),
        "wg1": (512, 256), "wg2": (256, 512),
    }
    params = {}
    keys = jax.random.split(key, 2 * len(shapes))
    for idx, (name, shp) in enumerate(sorted(shapes.items())):
        fan_in = shp[0]
        params[name] = (jax.random.normal(keys[2 * idx], shp, F32)
                        / jnp.sqrt(jnp.asarray(fan_in, F32)))
        bname = "b" + name[1:]
        params[bname] = 0.01 * jax.random.normal(keys[2 * idx + 1], (1, shp[1]), F32)
    return params


if __name__ == "__main__":
    key = jax.random.PRNGKey(0)
    kp_, kd_ = jax.random.split(key)
    params = init_params(kp_)

    # Small synthetic batch: 2 "images", 16 pairs each, 8 instances each.
    n_images, n_pairs, n_inst = 2, 16, 8
    dkeys = jax.random.split(kd_, 5 * n_images)

    pair_features = []
    pair_instances = []
    pred_instances = []
    relation_instance_features = []
    for i in range(n_images):
        k0, k1, k2, k3, k4 = dkeys[5 * i:5 * i + 5]
        pair_features.append(jax.random.normal(k0, (n_pairs, 2048), F32))
        pair_instances.append({
            "num_pairs": n_pairs,
            "pred_pair_locations": jax.random.normal(k1, (n_pairs, 8), F32),
            "pred_pair_instance_relate_matrix":
                jax.random.uniform(k2, (n_pairs, n_inst), F32),
            "pred_pair_interest":
                (jax.random.uniform(k3, (n_pairs,), F32) > 0.7).astype(F32),
        })
        relation_instance_features.append(jax.random.normal(k4, (n_inst, 512), F32))
        pred_instances.append({"num_instances": n_inst})

    preds, feats, losses, metrics = pair_head20_forward(
        pair_features, pair_instances, pred_instances,
        relation_instance_features, params, training=True)

    jax.block_until_ready(preds)
    jax.block_until_ready(feats)
    jax.block_until_ready(losses["pair_pos_loss"])
    jax.block_until_ready(losses["pair_neg_loss"])

    print("KERNEL_OK")
</pallas_src>

<mosaic_0001>
module attributes {stable_mosaic.version = 11 : i64} {
  func.func @_gcn_kernel(%arg0: i32, %arg1: memref<1x16x128xbf16, #tpu.memory_space<vmem>>, %arg2: memref<1x128x512xbf16, #tpu.memory_space<vmem>>, %arg3: memref<512x256xbf16, #tpu.memory_space<vmem>>, %arg4: memref<1x256xf32, #tpu.memory_space<vmem>>, %arg5: memref<256x512xbf16, #tpu.memory_space<vmem>>, %arg6: memref<1x512xf32, #tpu.memory_space<vmem>>, %arg7: memref<1x16x512xbf16, #tpu.memory_space<vmem>>) attributes {dimension_semantics = [#tpu.dimension_semantics<parallel>], iteration_bounds = array<i64: 2>, scalar_prefetch = 0 : i64, scratch_operands = 0 : i64, tpu.core_type = #tpu.core_type<tc>, window_params = [{transform_indices = @transform_0, window_bounds = array<i64: 1, 16, 128>}, {transform_indices = @transform_1, window_bounds = array<i64: 1, 128, 512>}, {pipeline_mode = #tpu.pipeline_mode<synchronous>, transform_indices = @transform_2, window_bounds = array<i64: 512, 256>}, {pipeline_mode = #tpu.pipeline_mode<synchronous>, transform_indices = @transform_3, window_bounds = array<i64: 1, 256>}, {pipeline_mode = #tpu.pipeline_mode<synchronous>, transform_indices = @transform_4, window_bounds = array<i64: 256, 512>}, {pipeline_mode = #tpu.pipeline_mode<synchronous>, transform_indices = @transform_5, window_bounds = array<i64: 1, 512>}, {transform_indices = @transform_6, window_bounds = array<i64: 1, 16, 512>}]} {
    %c0 = arith.constant 0 : index
    %c0_0 = arith.constant 0 : index
    %c0_1 = arith.constant 0 : index
    %0 = vector.load %arg1[%c0, %c0_0, %c0_1] : memref<1x16x128xbf16, #tpu.memory_space<vmem>>, vector<1x16x128xbf16>
    %1 = vector.shape_cast %0 : vector<1x16x128xbf16> to vector<16x128xbf16>
    %c0_2 = arith.constant 0 : index
    %c0_3 = arith.constant 0 : index
    %c0_4 = arith.constant 0 : index
    %2 = vector.load %arg2[%c0_2, %c0_3, %c0_4] : memref<1x128x512xbf16, #tpu.memory_space<vmem>>, vector<1x128x512xbf16>
    %3 = vector.shape_cast %2 : vector<1x128x512xbf16> to vector<128x512xbf16>
    %cst = arith.constant dense<0.000000e+00> : vector<16x512xf32>
    %4 = tpu.matmul %1, %3, %cst {dimension_numbers = #tpu.dot_dimension_numbers<[1], [0], [0], [1], [0, 0, 1, 1], [], []>} : vector<16x128xbf16>, vector<128x512xbf16>, vector<16x512xf32> -> vector<16x512xf32>
    %5 = arith.truncf %4 : vector<16x512xf32> to vector<16x512xbf16>
    %c0_5 = arith.constant 0 : index
    %c0_6 = arith.constant 0 : index
    %6 = vector.load %arg3[%c0_5, %c0_6] : memref<512x256xbf16, #tpu.memory_space<vmem>>, vector<512x256xbf16>
    %cst_7 = arith.constant dense<0.000000e+00> : vector<16x256xf32>
    %7 = tpu.matmul %5, %6, %cst_7 {dimension_numbers = #tpu.dot_dimension_numbers<[1], [0], [0], [1], [0, 0, 1, 1], [], []>} : vector<16x512xbf16>, vector<512x256xbf16>, vector<16x256xf32> -> vector<16x256xf32>
    %c0_8 = arith.constant 0 : index
    %c0_9 = arith.constant 0 : index
    %8 = vector.load %arg4[%c0_8, %c0_9] : memref<1x256xf32, #tpu.memory_space<vmem>>, vector<1x256xf32>
    %9 = vector.broadcast %8 : vector<1x256xf32> to vector<16x256xf32>
    %10 = arith.addf %7, %9 : vector<16x256xf32>
    %cst_10 = arith.constant 0.000000e+00 : f32
    %11 = vector.broadcast %cst_10 : f32 to vector<16x256xf32>
    %12 = arith.maximumf %10, %11 : vector<16x256xf32>
    %13 = arith.truncf %12 : vector<16x256xf32> to vector<16x256xbf16>
    %c0_11 = arith.constant 0 : index
    %c0_12 = arith.constant 0 : index
    %14 = vector.load %arg5[%c0_11, %c0_12] : memref<256x512xbf16, #tpu.memory_space<vmem>>, vector<256x512xbf16>
    %cst_13 = arith.constant dense<0.000000e+00> : vector<16x512xf32>
    %15 = tpu.matmul %13, %14, %cst_13 {dimension_numbers = #tpu.dot_dimension_numbers<[1], [0], [0], [1], [0, 0, 1, 1], [], []>} : vector<16x256xbf16>, vector<256x512xbf16>, vector<16x512xf32> -> vector<16x512xf32>
    %c0_14 = arith.constant 0 : index
    %c0_15 = arith.constant 0 : index
    %16 = vector.load %arg6[%c0_14, %c0_15] : memref<1x512xf32, #tpu.memory_space<vmem>>, vector<1x512xf32>
    %17 = vector.broadcast %16 : vector<1x512xf32> to vector<16x512xf32>
    %18 = arith.addf %15, %17 : vector<16x512xf32>
    %cst_16 = arith.constant 0.000000e+00 : f32
    %19 = vector.broadcast %cst_16 : f32 to vector<16x512xf32>
    %20 = arith.maximumf %18, %19 : vector<16x512xf32>
    %21 = arith.truncf %20 : vector<16x512xf32> to vector<16x512xbf16>
    %c0_17 = arith.constant 0 : index
    %c0_18 = arith.constant 0 : index
    %c0_19 = arith.constant 0 : index
    %22 = vector.load %arg7[%c0_17, %c0_18, %c0_19] : memref<1x16x512xbf16, #tpu.memory_space<vmem>>, vector<1x16x512xbf16>
    %23 = vector.shape_cast %22 : vector<1x16x512xbf16> to vector<16x512xbf16>
    %24 = vector.shape_cast %21 : vector<16x512xbf16> to vector<1x16x512xbf16>
    tpu.vector_store %arg7[%c0_17, %c0_18, %c0_19], %24 {strides = array<i32>} : memref<1x16x512xbf16, #tpu.memory_space<vmem>>, vector<1x16x512xbf16>,
    return
  }
  func.func @transform_0(%arg0: i32) -> (i32, i32, i32) {
    %c0_i32 = arith.constant 0 : i32
    %c0_i32_0 = arith.constant 0 : i32
    %c0_i32_1 = arith.constant 0 : i32
    return %arg0, %c0_i32, %c0_i32_0 : i32, i32, i32
  }
  func.func @transform_1(%arg0: i32) -> (i32, i32, i32) {
    %c0_i32 = arith.constant 0 : i32
    %c0_i32_0 = arith.constant 0 : i32
    %c0_i32_1 = arith.constant 0 : i32
    return %arg0, %c0_i32, %c0_i32_0 : i32, i32, i32
  }
  func.func @transform_2(%arg0: i32) -> (i32, i32) {
    %c0_i32 = arith.constant 0 : i32
    %c0_i32_0 = arith.constant 0 : i32
    %c0_i32_1 = arith.constant 0 : i32
    return %c0_i32, %c0_i32_0 : i32, i32
  }
  func.func @transform_3(%arg0: i32) -> (i32, i32) {
    %c0_i32 = arith.constant 0 : i32
    %c0_i32_0 = arith.constant 0 : i32
    %c0_i32_1 = arith.constant 0 : i32
    return %c0_i32, %c0_i32_0 : i32, i32
  }
  func.func @transform_4(%arg0: i32) -> (i32, i32) {
    %c0_i32 = arith.constant 0 : i32
    %c0_i32_0 = arith.constant 0 : i32
    %c0_i32_1 = arith.constant 0 : i32
    return %c0_i32, %c0_i32_0 : i32, i32
  }
  func.func @transform_5(%arg0: i32) -> (i32, i32) {
    %c0_i32 = arith.constant 0 : i32
    %c0_i32_0 = arith.constant 0 : i32
    %c0_i32_1 = arith.constant 0 : i32
    return %c0_i32, %c0_i32_0 : i32, i32
  }
  func.func @transform_6(%arg0: i32) -> (i32, i32, i32) {
    %c0_i32 = arith.constant 0 : i32
    %c0_i32_0 = arith.constant 0 : i32
    %c0_i32_1 = arith.constant 0 : i32
    return %arg0, %c0_i32, %c0_i32_0 : i32, i32, i32
  }
}

</mosaic_0001>

<bundles_post_ra>
// kernel: tpu_custom_call.1
= control target key start
LH: loop header
LB: loop body
LE: loop exit
PB: predicated region body
PF: predicated region fallthrough
CT: control target
= control target key end

     0   :  { %s2897_s0 = inlined_call_operand.hbm [shape: bf16[2,16,128], index: 0, kind: input, shape index: {}]   ;;  %s2898_s1 = inlined_call_operand.hbm [shape: bf16[2,128,512], index: 1, kind: input, shape index: {}]   ;;  %s2899_s2 = inlined_call_operand.hbm [shape: bf16[512,256], index: 2, kind: input, shape index: {}]   ;;  %s2900_s3 = inlined_call_operand.vmem [shape: f32[1,256], index: 3, kind: input, shape index: {}]   ;;  %s2901_s4 = inlined_call_operand.hbm [shape: bf16[256,512], index: 4, kind: input, shape index: {}]   ;;  %s2902_s5 = inlined_call_operand.vmem [shape: f32[1,512], index: 5, kind: input, shape index: {}]   ;;  %s2903_s6 = inlined_call_operand.hbm [shape: bf16[2,16,512], index: 6, kind: output, shape index: {}]  }
   0x1   :  { %2909 = sst [smem:[#allocation17_spill]] %s2897_s0 }
   0x2   :  { %2910 = sst [smem:[#allocation18_spill]] %s2899_s2 }
   0x3   :  { %2911 = sst [smem:[#allocation19_spill]] %s2901_s4 }
   0x4   :  { %11 = vsyncpa [#allocation3], 0 }
   0x5   :  { %13 = vsyncpa [#allocation3 + $0x1], 0 }
   0x6   :  { %14 = vsyncpa [#allocation6], 0 }
   0x7   :  { %16 = vsyncpa [#allocation6 + $0x1], 0 }
   0x8   :  { %17 = vsyncpa [#allocation9], 0 }
   0x9   :  { %18 = vsyncpa [#allocation4], 0 }
   0xa   :  { %20 = vsyncpa [#allocation4 + $0x1], 0  ;;  %s2544_s21 = smov 0   ;;  %s2546_s22 = smov 0  }
   0xb   :  { %s2548_s23 = smov 0   ;;  %s2550_s24 = smov 0  }
   0xc LB: > { %s2565_s25 = sadd.s32 4294967295, %s2493_s24   ;;  %s1775_s26 = sadd.s32 4294967294, %s2493_s24   ;;  %s2493_s24 = sphi %s2550_s24, %s2938_s24   ;;  %s2489_s23 = sphi %s2548_s23, %s2937_s23   ;;  %s2485_s22 = sphi %s2546_s22, %s2936_s22   ;;  %s2481_s21 = sphi %s2544_s21, %s2935_s21  }
   0xd   : > { %p46_p0 = scmp.ne.s32.totalorder %s2485_s22, %s2481_s21  ;;  %p2904_p1 = scmp.eq.s32.totalorder %s2565_s25, 0 }
   0xe   : > { %p186_p3 = scmp.eq.s32.totalorder %s1775_s26, 1  ;;  %p1776_p5 = scmp.ge.s32.totalorder %s2493_s24, 1 }
   0xf   : > { %p2574_p4 = por %p2904_p1, %p46_p0  ;;  %p193_p7 = scmp.lt.s32.totalorder %s2493_s24, 3 }
  0x10   : > { %p2579_p6 = por %p186_p3, %p46_p0  ;;  %s2495_s30 = smov [#allocation7]  }
  0x11   : > { %s2912_s27 = scalar_select %p2574_p4, 1, 0 }
  0x12   : > { %s2913_s28 = scalar_select %p2579_p6, 1, 0 }
  0x13   : > { %p2584_p8 = pnand %p1776_p5, %p193_p7  ;;  %s205_s7 = sshll.u32 %s2495_s30, 4  ;;  %s2588_s7 = int_to_ptr.vmem [resolvable:$true] %s205_s7 }
  0x14   : > { %s2496_s9 = smov [#allocation8]   ;;  %s2916_s2 = sld [smem:[#allocation18_spill]] }
  0x15   : > { %p1991_p9 = pneg %p2584_p8  ;;  %s221_s10 = sshll.u32 %s2496_s9, 4  ;;  %s2599_s10 = int_to_ptr.vmem [resolvable:$true] %s221_s10 }
  0x17   : > { %p2595_p11 = pnand %p1991_p9, %p2904_p1 }
  0x19   : > { %p2301_p13 = pneg %p2595_p11 }
  0x1a   : > { %s2299_s13 = scalar_lea.hbm %s2916_s2, 8192 }
  0x1b   : > { %p2300_p12 = scmp.ne.s32.totalorder %s2916_s2, %s2299_s13  ;;  %p2306_p5 = scmp.lt.u32.totalorder %s2299_s13, %s2916_s2 }
  0x1d   : > { %p2302_p0 = pnand %p2301_p13, %p2300_p12 }
  0x1f   : > { %p2303_p3 = pneg %p2302_p0 }
  0x21   : > { %p2308_p7 = pnand %p2306_p5, %p2303_p3 }
  0x23   : > { %2311 = shalt.err (!%p2308_p7)
}
  0x24   : > { %s2312_s18 = scalar_lea.vmem %s2588_s7, 8192  ;;  %p2320_p2 = scmp.lt.s32.totalorder %s2588_s7, %s2588_s7 }
  0x25   : > { %p2313_p9 = scmp.ne.s32.totalorder %s2588_s7, %s2312_s18  ;;  %p2321_p12 = scmp.lt.s32.totalorder %s2312_s18, %s2312_s18 }
  0x27   : > { %p2315_p10 = pnand %p2313_p9, %p2301_p13  ;;  %p2322_p0 = por %p2321_p12, %p2320_p2 }
  0x29   : > { %p2316_p1 = pneg %p2315_p10 }
  0x2b   : > { %p2323_p6 = pnand %p2322_p0, %p2316_p1 }
  0x2d   : > { %2326 = shalt.err (!%p2323_p6)
}
  0x2e   : > { %s2497_s19 = smov 128   ;;  %s2498_s20 = smov 8  }
  0x2f   : > { %1994 = dma.hbm_to_vmem [thread:$0]  (!%p2595_p11), %s2916_s2, 8192, %s2588_s7, [#allocation6], %s2497_s19, %s2497_s19, %s2498_s20  }
  0x30   : > { %s2917_s4 = sld [smem:[#allocation19_spill]] }
  0x36   : > { %s2327_s12 = scalar_lea.hbm %s2917_s4, 8192 }
  0x37   : > { %p2328_p2 = scmp.ne.s32.totalorder %s2917_s4, %s2327_s12  ;;  %p2334_p10 = scmp.lt.u32.totalorder %s2327_s12, %s2917_s4 }
  0x39   : > { %p2330_p1 = pnand %p2328_p2, %p2301_p13 }
  0x3b   : > { %p2331_p6 = pneg %p2330_p1 }
  0x3d   : > { %p2336_p3 = pnand %p2334_p10, %p2331_p6 }
  0x3f   : > { %2339 = shalt.err (!%p2336_p3)
}
  0x40   : > { %s2340_s7 = scalar_lea.vmem %s2599_s10, 8192  ;;  %p2348_p12 = scmp.lt.s32.totalorder %s2599_s10, %s2599_s10 }
  0x41   : > { %p2341_p5 = scmp.ne.s32.totalorder %s2599_s10, %s2340_s7  ;;  %p2349_p0 = scmp.lt.s32.totalorder %s2340_s7, %s2340_s7 }
  0x43   : > { %p2343_p7 = pnand %p2341_p5, %p2301_p13  ;;  %p2350_p2 = por %p2349_p0, %p2348_p12 }
  0x45   : > { %p2344_p9 = pneg %p2343_p7 }
  0x47   : > { %p2351_p1 = pnand %p2350_p2, %p2344_p9 }
  0x49   : > { %2354 = shalt.err (!%p2351_p1)
}
  0x4a   : > { %s2905_s17 = smov 256   ;;  %s2906_s18 = smov 16  }
  0x4b   : > { %1997 = dma.hbm_to_vmem [thread:$0]  (!%p2595_p11), %s2917_s4, 8192, %s2599_s10, [#allocation9], %s2905_s17, %s2905_s17, %s2906_s18  }
  0x4c   : > { %s2657_s26 = sadd.s32 1, %s2493_s24   ;;  %s33_s9 = sadd.s32 1, %s2489_s23 }
  0x4d   : > { %s30_s30 = ssub.s32 %s2493_s24, %s2657_s26  ;;  %p40_p6 = scmp.ne.s32.totalorder %s2489_s23, %s2485_s22 }
  0x4e   : > { %p31_p13 = scmp.eq.s32.totalorder %s30_s30, 0  ;;  %p41_p10 = scmp.eq.s32.totalorder %s2493_s24, 0 }
  0x4f   : > { %p2919_p5 = scmp.eq.s32.totalorder %s2565_s25, 1  ;;  %p2011_p9 = scmp.lt.s32.totalorder %s2493_s24, 2 }
  0x50   : > { %s2666_s11 = scalar_select %p31_p13, %s2489_s23, %s33_s9  }
  0x51   : > { %p42_p3 = por %p41_p10, %p40_p6  ;;  %p2670_p7 = por %p2919_p5, %p40_p6 }
  0x52   : > { %2918 = sst [smem:[#allocation16_spill]] %s2666_s11  ;;  %s2676_s12 = sand.u32 1, %s2489_s23  }
  0x53   : > { %s2920_s8 = scalar_select %p2670_p7, 1, 0 }
  0x54   : > { %s1780_s10 = sshll.u32 %s2676_s12, 3  ;;  %s1962_s13 = sshll.u32 %s2493_s24, 7 }
  0x55   : > { %s2921_s0 = sld [smem:[#allocation17_spill]]  ;;  %s242_s7 = scalar_lea.vmem [#allocation2], %s1780_s10 }
  0x56   : > { %s249_s19 = sshll.u32 %s242_s7, 4  ;;  %p2687_p11 = pnand %p2011_p9, %p42_p3  ;;  %s2685_s19 = int_to_ptr.vmem [resolvable:$true] %s249_s19 }
  0x57   : > { %s239_s9 = scalar_lea.sflag [#allocation3], %s2676_s12 }
  0x58   : > { %p2357_p0 = pneg %p2687_p11 }
  0x5b   : > { %s2683_s16 = scalar_lea.hbm %s2921_s0, %s1962_s13  ;;  %s2360_s14 = scalar_lea.hbm %s2921_s0, 256 }
  0x5c   : > { %s2355_s17 = scalar_lea.hbm %s2683_s16, 128  ;;  %p2361_p13 = scmp.lt.u32.totalorder %s2683_s16, %s2921_s0 }
  0x5d   : > { %p2356_p12 = scmp.ne.s32.totalorder %s2683_s16, %s2355_s17  ;;  %p2362_p6 = scmp.lt.u32.totalorder %s2360_s14, %s2355_s17 }
  0x5e   : > { %p2364_p3 = scmp.lt.u32.totalorder %s2355_s17, %s2683_s16 }
  0x5f   : > { %p2358_p2 = pnand %p2357_p0, %p2356_p12  ;;  %p2363_p10 = por %p2362_p6, %p2361_p13 }
  0x61   : > { %p2359_p1 = pneg %p2358_p2  ;;  %p2365_p5 = por %p2364_p3, %p2363_p10 }
  0x63   : > { %p2366_p9 = pnand %p2365_p5, %p2359_p1 }
  0x65   : > { %2369 = shalt.err (!%p2366_p9)
}
  0x66   : > { %s2370_s18 = scalar_lea.vmem %s2685_s19, 128  ;;  %s2501_s10 = smov [#allocation2]  }
  0x67   : > { %p2371_p12 = scmp.ne.s32.totalorder %s2685_s19, %s2370_s18  ;;  %s2375_s13 = sshll.u32 %s2501_s10, 4  ;;  %s2376_s13 = int_to_ptr.vmem [resolvable:$false] %s2375_s13 }
  0x68   : > { %s2377_s15 = scalar_lea.vmem %s2376_s13, 256  ;;  %p2378_p4 = scmp.lt.s32.totalorder %s2685_s19, %s2376_s13 }
  0x69   : > { %p2373_p2 = pnand %p2371_p12, %p2357_p0  ;;  %p2379_p13 = scmp.lt.s32.totalorder %s2377_s15, %s2370_s18 }
  0x6b   : > { %p2374_p7 = pneg %p2373_p2  ;;  %p2380_p6 = por %p2379_p13, %p2378_p4 }
  0x6d   : > { %p2381_p10 = pnand %p2380_p6, %p2374_p7 }
  0x6f   : > { %2384 = shalt.err (!%p2381_p10)
}
  0x70   : > { %s2502_s17 = smov 64   ;;  %s2503_s14 = smov 4  }
  0x71   : > { %2001 = dma.hbm_to_vmem [thread:$0]  (!%p2687_p11), %s2683_s16, 128, %s2685_s19, %s239_s9, %s2502_s17, %s2502_s17, %s2503_s14  }
  0x72   : > { %s1783_s7 = sshll.u32 %s2676_s12, 8  ;;  %s1963_s10 = sshll.u32 %s2493_s24, 12 }
  0x73   : > { %s2725_s15 = scalar_lea.hbm %s2898_s1, %s1963_s10  ;;  %s263_s30 = scalar_lea.vmem [#allocation5], %s1783_s7 }
  0x74   : > { %s270_s0 = sshll.u32 %s263_s30, 4  ;;  %s2923_s2 = sand.u32 1, %s2493_s24   ;;  %s2727_s0 = int_to_ptr.vmem [resolvable:$true] %s270_s0 }
  0x75   : > { %s2731_s4 = scalar_lea.sflag [#allocation6], %s2923_s2  ;;  %s2385_s11 = scalar_lea.hbm %s2725_s15, 4096 }
  0x76   : > { %p2386_p4 = scmp.ne.s32.totalorder %s2725_s15, %s2385_s11  ;;  %s2390_s19 = scalar_lea.hbm %s2898_s1, 8192 }
  0x77   : > { %p2391_p3 = scmp.lt.u32.totalorder %s2725_s15, %s2898_s1  ;;  %p2392_p5 = scmp.lt.u32.totalorder %s2390_s19, %s2385_s11 }
  0x78   : > { %p2388_p7 = pnand %p2386_p4, %p2357_p0  ;;  %p2394_p12 = scmp.lt.u32.totalorder %s2385_s11, %s2725_s15 }
  0x79   : > { %p2393_p9 = por %p2392_p5, %p2391_p3 }
  0x7a   : > { %p2389_p1 = pneg %p2388_p7 }
  0x7b   : > { %p2395_p2 = por %p2394_p12, %p2393_p9 }
  0x7d   : > { %p2396_p13 = pnand %p2395_p2, %p2389_p1 }
  0x7f   : > { %2399 = shalt.err (!%p2396_p13)
}
  0x80   : > { %s2400_s2 = scalar_lea.vmem %s2727_s0, 4096  ;;  %s2504_s30 = smov [#allocation5]  }
  0x81   : > { %p2401_p6 = scmp.ne.s32.totalorder %s2727_s0, %s2400_s2  ;;  %s2405_s14 = sshll.u32 %s2504_s30, 4  ;;  %s2406_s14 = int_to_ptr.vmem [resolvable:$false] %s2405_s14 }
  0x82   : > { %s2407_s7 = scalar_lea.vmem %s2406_s14, 8192  ;;  %p2408_p7 = scmp.lt.s32.totalorder %s2727_s0, %s2406_s14 }
  0x83   : > { %p2403_p10 = pnand %p2401_p6, %p2357_p0  ;;  %p2409_p3 = scmp.lt.s32.totalorder %s2407_s7, %s2400_s2 }
  0x85   : > { %p2404_p4 = pneg %p2403_p10  ;;  %p2410_p5 = por %p2409_p3, %p2408_p7 }
  0x87   : > { %p2411_p9 = pnand %p2410_p5, %p2404_p4 }
  0x89   : > { %2414 = shalt.err (!%p2411_p9)
}
  0x8a   : > { %s2924_s11 = smov 16   ;;  %s2925_s10 = smov 256  }
  0x8b   : > { %2004 = dma.hbm_to_vmem [thread:$0]  (!%p2687_p11), %s2725_s15, 4096, %s2727_s0, %s2731_s4, %s2925_s10, %s2925_s10, %s2924_s11  }
  0x8c   : > { %282 = sbr.rel (%p2584_p8) target bundleno = 995 (0x3e3), region = 44  ;;  %s2763_s13 = sand.u32 (!%p2584_p8), 1, %s2485_s22  }
  0x8d   : > { %s1787_s18 = sshll.u32 (!%p2584_p8), %s2763_s13, 3  ;;  %s285_s12 = scalar_lea.sflag (!%p2584_p8), [#allocation3], %s2763_s13 }
  0x8e   : > { %s2767_s16 = scalar_lea.vmem (!%p2584_p8), [#allocation2], %s1787_s18  ;;  %p2926_p0 = scmp.ne.s32.totalorder (!%p2584_p8), %s2912_s27, 0 }
  0x93   : > { %2460 = dma.done.wait (%p2926_p0), %s285_s12, 128  }
  0x94   : > { %2462 = vsyncadd (%p2926_p0), %s285_s12, 4294967168  ;;  %s293_s0 = sand.u32 1, %s2565_s25   ;;  %s1788_s4 = sshll.u32 %s2763_s13, 8 }
  0x95   : > { %s294_s29 = scalar_lea.sflag [#allocation6], %s293_s0  ;;  %s2775_s20 = scalar_lea.vmem [#allocation5], %s1788_s4 }
  0x96   : > { %2464 = dma.done.wait (%p2926_p0), %s294_s29, 4096  }
  0x97   : > { %2466 = vsyncadd (%p2926_p0), %s294_s29, 4294963200  ;;  %p2927_p8 = scmp.eq.s32.totalorder %s2565_s25, 0 }
  0x99   : > { %2468 = dma.done.wait (%p2927_p8), [#allocation6], 8192   ;;  %p2928_p11 = pmov %p2927_p8 }
  0x9a   : > { %p2929_p1 = pmov %p2927_p8 }
  0x9b   : > { %2470 = vsyncadd (%p2928_p11), [#allocation6], 4294959104 }
  0x9c   : > { %2472 = dma.done.wait (%p2929_p1), [#allocation9], 8192   ;;  %p2930_p12 = pmov %p2929_p1 }
  0x9d   : > { %v2505_v0 = vmov 0   ;;  %v2058_v1 = vld [vmem:[%s2775_s20 + $0x4] ss:$16 sps:$4 sm:$0xff]   ;;  %v2060_v2 = vld [vmem:[%s2775_s20] ss:$16 sps:$4 sm:$0xff]   ;;  %s1791_s17 = sshll.u32 %s2763_s13, 5 }
  0x9e   : > { %2474 = vsyncadd (%p2930_p12), [#allocation9], 4294959104  ;;  %572 = vmatprep.mubr.bf16.mxu0 %v2505_v0  ;;  %615 = vmatprep.mubr.bf16.mxu1 %v2505_v0  ;;  %v2061_v3 = vld [vmem:[%s2775_s20 + $0x24] ss:$16 sps:$4 sm:$0xff]   ;;  %v2063_v4 = vld [vmem:[%s2775_s20 + $0x20] ss:$16 sps:$4 sm:$0xff]  }
  0x9f   : > { %540 = vmatprep.subr.bf16.mxu0 %v2058_v1  ;;  %v2064_v5 = vld [vmem:[%s2775_s20 + $0x44] ss:$16 sps:$4 sm:$0xff]   ;;  %v2066_v6 = vld [vmem:[%s2775_s20 + $0x40] ss:$16 sps:$4 sm:$0xff]   ;;  %v2083_v10 = vld [vmem:[%s2775_s20 + $0xc] ss:$16 sps:$4 sm:$0xff]  }
  0xa0   : > { %541 = vmatpush1.bf16.msra.mxu0 %v2060_v2  ;;  %v2067_v7 = vld [vmem:[%s2775_s20 + $0x64] ss:$16 sps:$4 sm:$0xff]   ;;  %v2069_v8 = vld [vmem:[%s2775_s20 + $0x60] ss:$16 sps:$4 sm:$0xff]   ;;  %v2085_v11 = vld [vmem:[%s2775_s20 + $0x8] ss:$16 sps:$4 sm:$0xff]   ;;  %583 = vmatprep.subr.bf16.mxu1 %v2083_v10 }
  0xa1   : > { %542 = vmatprep.subr.bf16.mxu0 %v2061_v3  ;;  %v2070_v9 = vld [vmem:[%s2775_s20 + $0x84] ss:$16 sps:$4 sm:$0xff]   ;;  %v2086_v12 = vld [vmem:[%s2775_s20 + $0x2c] ss:$16 sps:$4 sm:$0xff]   ;;  %v2072_v13 = vld [vmem:[%s2775_s20 + $0x80] ss:$16 sps:$4 sm:$0xff]   ;;  %584 = vmatpush1.bf16.msra.mxu1 %v2085_v11 }
  0xa2   : > { %v2088_v14 = vld [vmem:[%s2775_s20 + $0x28] ss:$16 sps:$4 sm:$0xff]   ;;  %v2073_v15 = vld [vmem:[%s2775_s20 + $0xa4] ss:$16 sps:$4 sm:$0xff]   ;;  %585 = vmatprep.subr.bf16.mxu1 %v2086_v12  ;;  %v2089_v16 = vld [vmem:[%s2775_s20 + $0x4c] ss:$16 sps:$4 sm:$0xff]  }
  0xa3   : > { %v2075_v17 = vld [vmem:[%s2775_s20 + $0xa0] ss:$16 sps:$4 sm:$0xff]   ;;  %v2091_v18 = vld [vmem:[%s2775_s20 + $0x48] ss:$16 sps:$4 sm:$0xff]   ;;  %v2076_v19 = vld [vmem:[%s2775_s20 + $0xc4] ss:$16 sps:$4 sm:$0xff]  }
  0xa4   : > { %543 = vmatpush1.bf16.msra.mxu0 %v2063_v4  ;;  %v2092_v20 = vld [vmem:[%s2775_s20 + $0x6c] ss:$16 sps:$4 sm:$0xff]   ;;  %v2078_v21 = vld [vmem:[%s2775_s20 + $0xc0] ss:$16 sps:$4 sm:$0xff]   ;;  %v2094_v22 = vld [vmem:[%s2775_s20 + $0x68] ss:$16 sps:$4 sm:$0xff]  }
  0xa5   : > { %544 = vmatprep.subr.bf16.mxu0 %v2064_v5  ;;  %586 = vmatpush1.bf16.msra.mxu1 %v2088_v14  ;;  %v2079_v23 = vld [vmem:[%s2775_s20 + $0xe4] ss:$16 sps:$4 sm:$0xff]   ;;  %v2095_v24 = vld [vmem:[%s2775_s20 + $0x8c] ss:$16 sps:$4 sm:$0xff]   ;;  %v2081_v25 = vld [vmem:[%s2775_s20 + $0xe0] ss:$16 sps:$4 sm:$0xff]  }
  0xa6   : > { %587 = vmatprep.subr.bf16.mxu1 %v2089_v16  ;;  %v2097_v26 = vld [vmem:[%s2775_s20 + $0x88] ss:$16 sps:$4 sm:$0xff]   ;;  %v2098_v27 = vld [vmem:[%s2775_s20 + $0xac] ss:$16 sps:$4 sm:$0xff]   ;;  %v2203_v3 = vld [vmem:[#allocation8] ss:$16 sps:$4 sm:$0xff]  }
  0xa7   : > { %v2109_v28 = vld [vmem:[#allocation7 + $0x4] ss:$8 sps:$4 sm:$0xff]   ;;  %v2082_v29 = vld [vmem:[%s2767_s16] sm:$0xff]   ;;  %v2107_v31 = vld [vmem:[#allocation7] ss:$8 sps:$4 sm:$0xff]   ;;  %s338_s2 = scalar_lea.vmem [#allocation10], %s1791_s17 }
  0xa8   : > { %545 = vmatpush1.bf16.msra.mxu0 %v2066_v6  ;;  %v2100_v30 = vld [vmem:[%s2775_s20 + $0xa8] ss:$16 sps:$4 sm:$0xff]   ;;  %v2101_v32 = vld [vmem:[%s2775_s20 + $0xcc] ss:$16 sps:$4 sm:$0xff]   ;;  %v2205_v4 = vld [vmem:[#allocation8 + $0x4] ss:$16 sps:$4 sm:$0xff]  }
  0xa9   : > { %546 = vmatprep.subr.bf16.mxu0 %v2067_v7  ;;  %588 = vmatpush1.bf16.msra.mxu1 %v2091_v18  ;;  %v2112_v33 = vld [vmem:[#allocation7 + $0x14] ss:$8 sps:$4 sm:$0xff]   ;;  %v2103_v34 = vld [vmem:[%s2775_s20 + $0xc8] ss:$16 sps:$4 sm:$0xff]   ;;  %v2115_v37 = vld [vmem:[#allocation7 + $0x24] ss:$8 sps:$4 sm:$0xff]  }
  0xaa   : > { %589 = vmatprep.subr.bf16.mxu1 %v2092_v20  ;;  %v2110_v35 = vld [vmem:[#allocation7 + $0x10] ss:$8 sps:$4 sm:$0xff]   ;;  %v2104_v36 = vld [vmem:[%s2775_s20 + $0xec] ss:$16 sps:$4 sm:$0xff]   ;;  %v2113_v39 = vld [vmem:[#allocation7 + $0x20] ss:$8 sps:$4 sm:$0xff]  }
  0xab   : > { %v2106_v38 = vld [vmem:[%s2775_s20 + $0xe8] ss:$16 sps:$4 sm:$0xff]   ;;  %v2118_v40 = vld [vmem:[#allocation7 + $0x34] ss:$8 sps:$4 sm:$0xff]   ;;  %v2121_v42 = vld [vmem:[#allocation7 + $0x44] ss:$8 sps:$4 sm:$0xff]  }
  0xac   : > { %547 = vmatpush1.bf16.msra.mxu0 %v2069_v8  ;;  %v2116_v41 = vld [vmem:[#allocation7 + $0x30] ss:$8 sps:$4 sm:$0xff]   ;;  %v2119_v43 = vld [vmem:[#allocation7 + $0x40] ss:$8 sps:$4 sm:$0xff]   ;;  %v2124_v44 = vld [vmem:[#allocation7 + $0x54] ss:$8 sps:$4 sm:$0xff]  }
  0xad   : > { %548 = vmatprep.subr.bf16.mxu0 %v2070_v9  ;;  %590 = vmatpush1.bf16.msra.mxu1 %v2094_v22  ;;  %v2122_v45 = vld [vmem:[#allocation7 + $0x50] ss:$8 sps:$4 sm:$0xff]   ;;  %v2127_v46 = vld [vmem:[#allocation7 + $0x64] ss:$8 sps:$4 sm:$0xff]   ;;  %v2125_v47 = vld [vmem:[#allocation7 + $0x60] ss:$8 sps:$4 sm:$0xff]  }
  0xae   : > { %591 = vmatprep.subr.bf16.mxu1 %v2095_v24  ;;  %v2130_v48 = vld [vmem:[#allocation7 + $0x74] ss:$8 sps:$4 sm:$0xff]   ;;  %v2128_v49 = vld [vmem:[#allocation7 + $0x70] ss:$8 sps:$4 sm:$0xff]   ;;  %v2133_v50 = vld [vmem:[#allocation7 + $0x84] ss:$8 sps:$4 sm:$0xff]  }
  0xaf   : > { %v2131_v51 = vld [vmem:[#allocation7 + $0x80] ss:$8 sps:$4 sm:$0xff]   ;;  %v2136_v52 = vld [vmem:[#allocation7 + $0x94] ss:$8 sps:$4 sm:$0xff]   ;;  %v2134_v53 = vld [vmem:[#allocation7 + $0x90] ss:$8 sps:$4 sm:$0xff]  }
  0xb0   : > { %549 = vmatpush1.bf16.msra.mxu0 %v2072_v13  ;;  %v2139_v54 = vld [vmem:[#allocation7 + $0xa4] ss:$8 sps:$4 sm:$0xff]   ;;  %v2137_v55 = vld [vmem:[#allocation7 + $0xa0] ss:$8 sps:$4 sm:$0xff]   ;;  %v2142_v56 = vld [vmem:[#allocation7 + $0xb4] ss:$8 sps:$4 sm:$0xff]  }
  0xb1   : > { %550 = vmatprep.subr.bf16.mxu0 %v2073_v15  ;;  %592 = vmatpush1.bf16.msra.mxu1 %v2097_v26  ;;  %v2140_v57 = vld [vmem:[#allocation7 + $0xb0] ss:$8 sps:$4 sm:$0xff]   ;;  %v2145_v58 = vld [vmem:[#allocation7 + $0xc4] ss:$8 sps:$4 sm:$0xff]   ;;  %v2143_v59 = vld [vmem:[#allocation7 + $0xc0] ss:$8 sps:$4 sm:$0xff]  }
  0xb2   : > { %593 = vmatprep.subr.bf16.mxu1 %v2098_v27  ;;  %v2148_v60 = vld [vmem:[#allocation7 + $0xd4] ss:$8 sps:$4 sm:$0xff]   ;;  %v2146_v61 = vld [vmem:[#allocation7 + $0xd0] ss:$8 sps:$4 sm:$0xff]   ;;  %v2151_v62 = vld [vmem:[#allocation7 + $0xe4] ss:$8 sps:$4 sm:$0xff]  }
  0xb3   : > { %v2149_v63 = vld [vmem:[#allocation7 + $0xe0] ss:$8 sps:$4 sm:$0xff]   ;;  %v2154_v0 = vld [vmem:[#allocation7 + $0xf4] ss:$8 sps:$4 sm:$0xff]   ;;  %v2152_v1 = vld [vmem:[#allocation7 + $0xf0] ss:$8 sps:$4 sm:$0xff]  }
  0xb4   : > { %551 = vmatpush1.bf16.msra.mxu0 %v2075_v17  ;;  %v2157_v2 = vld [vmem:[#allocation7 + $0x104] ss:$8 sps:$4 sm:$0xff]   ;;  %v2206_v6 = vld [vmem:[#allocation8 + $0x20] ss:$16 sps:$4 sm:$0xff]   ;;  %s1660_s30 = sshll.u32 %s338_s2, 4  ;;  %s1968_s14 = sshll.u32 %s2565_s25, 9  ;;  %s2848_s30 = int_to_ptr.vmem [resolvable:$true] %s1660_s30 }
  0xb5   : > { %552 = vmatprep.subr.bf16.mxu0 %v2076_v19  ;;  %594 = vmatpush1.bf16.msra.mxu1 %v2100_v30  ;;  %v2208_v5 = vld [vmem:[#allocation8 + $0x24] ss:$16 sps:$4 sm:$0xff]   ;;  %v2209_v8 = vld [vmem:[#allocation8 + $0x40] ss:$16 sps:$4 sm:$0xff]   ;;  %s2853_s10 = scalar_lea.hbm %s2903_s6, %s1968_s14  ;;  %s1647_s18 = scalar_lea.sflag [#allocation4], %s2763_s13 }
  0xb6   : > { %595 = vmatprep.subr.bf16.mxu1 %v2101_v32  ;;  %v2211_v7 = vld [vmem:[#allocation8 + $0x44] ss:$16 sps:$4 sm:$0xff]   ;;  %v2212_v10 = vld [vmem:[#allocation8 + $0x60] ss:$16 sps:$4 sm:$0xff]   ;;  %s2415_s12 = scalar_lea.vmem %s2848_s30, 512  ;;  %p2931_p13 = scmp.ne.s32.totalorder %s2920_s8, 0 }
  0xb7   : > { %v2214_v9 = vld [vmem:[#allocation8 + $0x64] ss:$16 sps:$4 sm:$0xff]   ;;  %v2215_v12 = vld [vmem:[#allocation8 + $0x80] ss:$16 sps:$4 sm:$0xff]   ;;  %p2416_p2 = scmp.ne.s32.totalorder %s2848_s30, %s2415_s12  ;;  %s2506_s25 = smov [#allocation10]  }
  0xb8   : > { %553 = vmatpush1.bf16.msra.mxu0 %v2078_v21  ;;  %v2217_v11 = vld [vmem:[#allocation8 + $0x84] ss:$16 sps:$4 sm:$0xff]   ;;  %v2218_v14 = vld [vmem:[#allocation8 + $0xa0] ss:$16 sps:$4 sm:$0xff]   ;;  %s2419_s16 = sshll.u32 %s2506_s25, 4  ;;  %s2420_s16 = int_to_ptr.vmem [resolvable:$false] %s2419_s16 }
  0xb9   : > { %554 = vmatprep.subr.bf16.mxu0 %v2079_v23  ;;  %596 = vmatpush1.bf16.msra.mxu1 %v2103_v34  ;;  %v2220_v13 = vld [vmem:[#allocation8 + $0xa4] ss:$16 sps:$4 sm:$0xff]   ;;  %v2221_v16 = vld [vmem:[#allocation8 + $0xc0] ss:$16 sps:$4 sm:$0xff]   ;;  %p2417_p6 = pnand %p2416_p2, %p2931_p13  ;;  %s2421_s0 = scalar_lea.vmem %s2420_s16, 1024 }
  0xba   : > { %597 = vmatprep.subr.bf16.mxu1 %v2104_v36  ;;  %v2223_v15 = vld [vmem:[#allocation8 + $0xc4] ss:$16 sps:$4 sm:$0xff]   ;;  %v2224_v18 = vld [vmem:[#allocation8 + $0xe0] ss:$16 sps:$4 sm:$0xff]   ;;  %p2422_p4 = scmp.lt.s32.totalorder %s2848_s30, %s2420_s16  ;;  %p2423_p7 = scmp.lt.s32.totalorder %s2421_s0, %s2415_s12 }
  0xbb   : > { %v2226_v17 = vld [vmem:[#allocation8 + $0xe4] ss:$16 sps:$4 sm:$0xff]   ;;  %v2227_v20 = vld [vmem:[#allocation8 + $0x100] ss:$16 sps:$4 sm:$0xff]   ;;  %p2418_p10 = pneg %p2417_p6 }
  0xbc   : > { %555 = vmatpush1.bf16.msra.mxu0 %v2081_v25  ;;  %v2229_v19 = vld [vmem:[#allocation8 + $0x104] ss:$16 sps:$4 sm:$0xff]   ;;  %v2230_v22 = vld [vmem:[#allocation8 + $0x120] ss:$16 sps:$4 sm:$0xff]   ;;  %p2424_p3 = por %p2423_p7, %p2422_p4 }
  0xbd   : > { %1026 = vmatprep.subr.bf16.mxu0 %v2109_v28  ;;  %598 = vmatpush1.bf16.msra.mxu1 %v2106_v38  ;;  %v2232_v21 = vld [vmem:[#allocation8 + $0x124] ss:$16 sps:$4 sm:$0xff]   ;;  %v2233_v24 = vld [vmem:[#allocation8 + $0x140] ss:$16 sps:$4 sm:$0xff]  }
  0xbe   : > { %1524 = vmatprep.subr.bf16.mxu1 %v2205_v4  ;;  %v2235_v23 = vld [vmem:[#allocation8 + $0x144] ss:$16 sps:$4 sm:$0xff]   ;;  %v2236_v26 = vld [vmem:[#allocation8 + $0x160] ss:$16 sps:$4 sm:$0xff]   ;;  %p2425_p5 = pnand %p2424_p3, %p2418_p10 }
  0xbf   : > { %573 = vmatmul.mubr.bf16.vlgmr.msra.gmra.mrb[0].mxu0 %v2082_v29  ;;  %v2238_v25 = vld [vmem:[#allocation8 + $0x164] ss:$16 sps:$4 sm:$0xff]   ;;  %v2239_v28 = vld [vmem:[#allocation8 + $0x180] ss:$16 sps:$4 sm:$0xff]  }
  0xc0   : > { %1027 = vmatpush1.bf16.msra.mxu0 %v2107_v31  ;;  %616 = vmatmul.mubr.bf16.vlgmr.msra.gmra.mrb[0].mxu1 %v2082_v29  ;;  %v2241_v27 = vld [vmem:[#allocation8 + $0x184] ss:$16 sps:$4 sm:$0xff]   ;;  %v2242_v30 = vld [vmem:[#allocation8 + $0x1a0] ss:$16 sps:$4 sm:$0xff]  }
  0xc1   : > { %1028 = vmatprep.subr.bf16.mxu0 %v2112_v33  ;;  %1525 = vmatpush1.bf16.msra.mxu1 %v2203_v3  ;;  %v2244_v29 = vld [vmem:[#allocation8 + $0x1a4] ss:$16 sps:$4 sm:$0xff]   ;;  %v2191_v3 = vld [vmem:[#allocation7 + $0x1c0] ss:$8 sps:$4 sm:$0xff]  }
  0xc2   : > { %1526 = vmatprep.subr.bf16.mxu1 %v2208_v5  ;;  %v2160_v38 = vld [vmem:[#allocation7 + $0x114] ss:$8 sps:$4 sm:$0xff]   ;;  %v2194_v5 = vld [vmem:[#allocation7 + $0x1d0] ss:$8 sps:$4 sm:$0xff]  }
  0xc3   : > { %v2196_v4 = vld [vmem:[#allocation7 + $0x1d4] ss:$8 sps:$4 sm:$0xff]  }
  0xc4   : > { %1029 = vmatpush1.bf16.msra.mxu0 %v2110_v35 }
  0xc5   : > { %1030 = vmatprep.subr.bf16.mxu0 %v2115_v37  ;;  %1527 = vmatpush1.bf16.msra.mxu1 %v2206_v6  ;;  %v2155_v37 = vld [vmem:[#allocation7 + $0x100] ss:$8 sps:$4 sm:$0xff]   ;;  %v2199_v6 = vld [vmem:[#allocation7 + $0x1e4] ss:$8 sps:$4 sm:$0xff]  }
  0xc6   : > { %1528 = vmatprep.subr.bf16.mxu1 %v2211_v7  ;;  %v2197_v7 = vld [vmem:[#allocation7 + $0x1e0] ss:$8 sps:$4 sm:$0xff]  }
  0xc8   : > { %1031 = vmatpush1.bf16.msra.mxu0 %v2113_v39  ;;  %v2158_v39 = vld [vmem:[#allocation7 + $0x110] ss:$8 sps:$4 sm:$0xff]  }
  0xc9   : > { %1032 = vmatprep.subr.bf16.mxu0 %v2118_v40  ;;  %1529 = vmatpush1.bf16.msra.mxu1 %v2209_v8  ;;  %v2163_v40 = vld [vmem:[#allocation7 + $0x124] ss:$8 sps:$4 sm:$0xff]   ;;  %v2202_v8 = vld [vmem:[#allocation7 + $0x1f4] ss:$8 sps:$4 sm:$0xff]  }
  0xca   : > { %1530 = vmatprep.subr.bf16.mxu1 %v2214_v9  ;;  %v2200_v9 = vld [vmem:[#allocation7 + $0x1f0] ss:$8 sps:$4 sm:$0xff]  }
  0xcc   : > { %1033 = vmatpush1.bf16.msra.mxu0 %v2116_v41  ;;  %v2161_v41 = vld [vmem:[#allocation7 + $0x120] ss:$8 sps:$4 sm:$0xff]  }
  0xcd   : > { %1034 = vmatprep.subr.bf16.mxu0 %v2121_v42  ;;  %1531 = vmatpush1.bf16.msra.mxu1 %v2212_v10  ;;  %v2247_v10 = vld [vmem:[#allocation8 + $0x1c4] ss:$16 sps:$4 sm:$0xff]  }
  0xce   : > { %1532 = vmatprep.subr.bf16.mxu1 %v2217_v11  ;;  %v2245_v11 = vld [vmem:[#allocation8 + $0x1c0] ss:$16 sps:$4 sm:$0xff]  }
  0xd0   : > { %1035 = vmatpush1.bf16.msra.mxu0 %v2119_v43  ;;  %v2166_v43 = vld [vmem:[#allocation7 + $0x134] ss:$8 sps:$4 sm:$0xff]  }
  0xd1   : > { %1036 = vmatprep.subr.bf16.mxu0 %v2124_v44  ;;  %1533 = vmatpush1.bf16.msra.mxu1 %v2215_v12  ;;  %v2250_v12 = vld [vmem:[#allocation8 + $0x1e4] ss:$16 sps:$4 sm:$0xff]  }
  0xd2   : > { %1534 = vmatprep.subr.bf16.mxu1 %v2220_v13  ;;  %v2248_v13 = vld [vmem:[#allocation8 + $0x1e0] ss:$16 sps:$4 sm:$0xff]  }
  0xd4   : > { %1037 = vmatpush1.bf16.msra.mxu0 %v2122_v45 }
  0xd5   : > { %1038 = vmatprep.subr.bf16.mxu0 %v2127_v46  ;;  %1535 = vmatpush1.bf16.msra.mxu1 %v2218_v14  ;;  %v2253_v14 = vld [vmem:[#allocation8 + $0xc] ss:$16 sps:$4 sm:$0xff]  }
  0xd6   : > { %1536 = vmatprep.subr.bf16.mxu1 %v2223_v15  ;;  %v696_v15 = vlaneseq }
  0xd8   : > { %1039 = vmatpush1.bf16.msra.mxu0 %v2125_v47 }
  0xd9   : > { %1040 = vmatprep.subr.bf16.mxu0 %v2130_v48  ;;  %1537 = vmatpush1.bf16.msra.mxu1 %v2221_v16  ;;  %v2164_v48 = vld [vmem:[#allocation7 + $0x130] ss:$8 sps:$4 sm:$0xff]   ;;  %v2822_v16 = vshrl.u32 %v696_v15, 7 }
  0xda   : > { %1538 = vmatprep.subr.bf16.mxu1 %v2226_v17 }
  0xdb   : > { %v698_v17 = vsub.s32 0, %v2822_v16 }
  0xdc   : > { %1041 = vmatpush1.bf16.msra.mxu0 %v2128_v49 }
  0xdd   : > { %1042 = vmatprep.subr.bf16.mxu0 %v2133_v50  ;;  %1539 = vmatpush1.bf16.msra.mxu1 %v2224_v18  ;;  %v2169_v50 = vld [vmem:[#allocation7 + $0x144] ss:$8 sps:$4 sm:$0xff]   ;;  %v694_v18 = vld [vmem:[%s2900_s3] sm:$0x3] }
  0xde   : > { %1540 = vmatprep.subr.bf16.mxu1 %v2229_v19  ;;  %v702_v19 = vsub.s32 1, %v2822_v16 }
  0xe0   : > { %1043 = vmatpush1.bf16.msra.mxu0 %v2131_v51  ;;  %v2167_v51 = vld [vmem:[#allocation7 + $0x140] ss:$8 sps:$4 sm:$0xff]  }
  0xe1   : > { %1044 = vmatprep.subr.bf16.mxu0 %v2136_v52  ;;  %1541 = vmatpush1.bf16.msra.mxu1 %v2227_v20  ;;  %v2172_v52 = vld [vmem:[#allocation7 + $0x154] ss:$8 sps:$4 sm:$0xff]   ;;  %v699_v20 = vrot.slane %v694_v18, %v698_v17 }
  0xe2   : > { %1542 = vmatprep.subr.bf16.mxu1 %v2232_v21  ;;  %v703_v21 = vrot.slane %v694_v18, %v702_v19 }
  0xe4   : > { %1045 = vmatpush1.bf16.msra.mxu0 %v2134_v53  ;;  %v2170_v53 = vld [vmem:[#allocation7 + $0x150] ss:$8 sps:$4 sm:$0xff]  }
  0xe5   : > { %1046 = vmatprep.subr.bf16.mxu0 %v2139_v54  ;;  %1543 = vmatpush1.bf16.msra.mxu1 %v2230_v22  ;;  %v2175_v54 = vld [vmem:[#allocation7 + $0x164] ss:$8 sps:$4 sm:$0xff]  }
  0xe6   : > { %1544 = vmatprep.subr.bf16.mxu1 %v2235_v23 }
  0xe8   : > { %1047 = vmatpush1.bf16.msra.mxu0 %v2137_v55  ;;  %v2173_v55 = vld [vmem:[#allocation7 + $0x160] ss:$8 sps:$4 sm:$0xff]  }
  0xe9   : > { %1048 = vmatprep.subr.bf16.mxu0 %v2142_v56  ;;  %1545 = vmatpush1.bf16.msra.mxu1 %v2233_v24  ;;  %v2178_v56 = vld [vmem:[#allocation7 + $0x174] ss:$8 sps:$4 sm:$0xff]  }
  0xea   : > { %1546 = vmatprep.subr.bf16.mxu1 %v2238_v25 }
  0xec   : > { %1049 = vmatpush1.bf16.msra.mxu0 %v2140_v57  ;;  %v2176_v57 = vld [vmem:[#allocation7 + $0x170] ss:$8 sps:$4 sm:$0xff]  }
  0xed   : > { %1050 = vmatprep.subr.bf16.mxu0 %v2145_v58  ;;  %1547 = vmatpush1.bf16.msra.mxu1 %v2236_v26  ;;  %v2181_v58 = vld [vmem:[#allocation7 + $0x184] ss:$8 sps:$4 sm:$0xff]  }
  0xee   : > { %1548 = vmatprep.subr.bf16.mxu1 %v2241_v27 }
  0xf0   : > { %1051 = vmatpush1.bf16.msra.mxu0 %v2143_v59  ;;  %v2179_v59 = vld [vmem:[#allocation7 + $0x180] ss:$8 sps:$4 sm:$0xff]  }
  0xf1   : > { %1052 = vmatprep.subr.bf16.mxu0 %v2148_v60  ;;  %1549 = vmatpush1.bf16.msra.mxu1 %v2239_v28  ;;  %v2184_v60 = vld [vmem:[#allocation7 + $0x194] ss:$8 sps:$4 sm:$0xff]  }
  0xf2   : > { %1550 = vmatprep.subr.bf16.mxu1 %v2244_v29 }
  0xf4   : > { %1053 = vmatpush1.bf16.msra.mxu0 %v2146_v61  ;;  %v2182_v61 = vld [vmem:[#allocation7 + $0x190] ss:$8 sps:$4 sm:$0xff]  }
  0xf5   : > { %1054 = vmatprep.subr.bf16.mxu0 %v2151_v62  ;;  %1551 = vmatpush1.bf16.msra.mxu1 %v2242_v30  ;;  %v2187_v62 = vld [vmem:[#allocation7 + $0x1a4] ss:$8 sps:$4 sm:$0xff]  }
  0xf6   : > { %1552 = vmatprep.subr.bf16.mxu1 %v2247_v10 }
  0xf8   : > { %1055 = vmatpush1.bf16.msra.mxu0 %v2149_v63  ;;  %v2185_v63 = vld [vmem:[#allocation7 + $0x1a0] ss:$8 sps:$4 sm:$0xff]  }
  0xf9   : > { %1056 = vmatprep.subr.bf16.mxu0 %v2154_v0  ;;  %v2190_v0 = vld [vmem:[#allocation7 + $0x1b4] ss:$8 sps:$4 sm:$0xff]   ;;  %1553 = vmatpush1.bf16.msra.mxu1 %v2245_v11 }
  0xfa   : > { %1554 = vmatprep.subr.bf16.mxu1 %v2250_v12 }
  0xfc   : > { %1057 = vmatpush1.bf16.msra.mxu0 %v2152_v1  ;;  %v2188_v1 = vld [vmem:[#allocation7 + $0x1b0] ss:$8 sps:$4 sm:$0xff]  }
  0xfd   : > { %1069 = vmatprep.subr.bf16.mxu0 %v2157_v2  ;;  %v2193_v2 = vld [vmem:[#allocation7 + $0x1c4] ss:$8 sps:$4 sm:$0xff]   ;;  %1555 = vmatpush1.bf16.msra.mxu1 %v2248_v13 }
  0xfe   : > { %1567 = vmatprep.subr.bf16.mxu1 %v2253_v14 }
 0x192   : > { %v574_v31 = vpop.f32.mrb[0].mxu0 }
 0x193   : > { %v576_v32 = vpop.f32.mrb[1].mxu0  ;;  %v617_v42 = vpop.f32.mrb[0].mxu1 }
 0x194   : > { %v578_v33 = vpop.f32.mrb[2].mxu0  ;;  %v619_v44 = vpop.f32.mrb[1].mxu1 }
 0x195   : > { %v626_v34 = vpack.c.bf16 %v578_v33, %v574_v31  ;;  %v580_v35 = vpop.f32.mrb[3].mxu0  ;;  %v621_v45 = vpop.f32.mrb[2].mxu1 }
 0x196   : > { %v627_v36 = vpack.c.bf16 %v580_v35, %v576_v32  ;;  %v628_v46 = vpack.c.bf16 %v621_v45, %v617_v42  ;;  %v623_v47 = vpop.f32.mrb[3].mxu1  ;;  %v2260_v42 = vld [vmem:[#allocation8 + $0x68] ss:$16 sps:$4 sm:$0xff]   ;;  %v2268_v45 = vld [vmem:[#allocation8 + $0xac] ss:$16 sps:$4 sm:$0xff]  }
 0x197   : > { %v629_v49 = vpack.c.bf16 %v623_v47, %v619_v44  ;;  %v2263_v44 = vld [vmem:[#allocation8 + $0x88] ss:$16 sps:$4 sm:$0xff]   ;;  %v2271_v47 = vld [vmem:[#allocation8 + $0xcc] ss:$16 sps:$4 sm:$0xff]  }
 0x198   : > { %1058 = vmatprep.mubr.bf16.mxu0 %v627_v36  ;;  %v2251_v36 = vld [vmem:[#allocation8 + $0x8] ss:$16 sps:$4 sm:$0xff]  }
 0x199   : > { %1059 = vmatmul.mubr.bf16.vlgmr.msra.gmra.mrb[4].mxu0 %v626_v34 }
 0x19a   : > { %1070 = vmatpush1.bf16.msra.mxu0 %v2155_v37  ;;  %1101 = vmatprep.mubr.bf16.mxu0 %v629_v49  ;;  %v2256_v37 = vld [vmem:[#allocation8 + $0x2c] ss:$16 sps:$4 sm:$0xff]  }
 0x19b   : > { %1071 = vmatprep.subr.bf16.mxu0 %v2160_v38  ;;  %v2254_v38 = vld [vmem:[#allocation8 + $0x28] ss:$16 sps:$4 sm:$0xff]   ;;  %v2274_v49 = vld [vmem:[#allocation8 + $0xec] ss:$16 sps:$4 sm:$0xff]  }
 0x19e   : > { %1072 = vmatpush1.bf16.msra.mxu0 %v2158_v39  ;;  %v2259_v39 = vld [vmem:[#allocation8 + $0x4c] ss:$16 sps:$4 sm:$0xff]  }
 0x19f   : > { %1073 = vmatprep.subr.bf16.mxu0 %v2163_v40  ;;  %v2257_v40 = vld [vmem:[#allocation8 + $0x48] ss:$16 sps:$4 sm:$0xff]  }
 0x1a2   : > { %1074 = vmatpush1.bf16.msra.mxu0 %v2161_v41  ;;  %v2262_v41 = vld [vmem:[#allocation8 + $0x6c] ss:$16 sps:$4 sm:$0xff]  }
 0x1a3   : > { %1075 = vmatprep.subr.bf16.mxu0 %v2166_v43  ;;  %v2265_v43 = vld [vmem:[#allocation8 + $0x8c] ss:$16 sps:$4 sm:$0xff]  }
 0x1a6   : > { %1076 = vmatpush1.bf16.msra.mxu0 %v2164_v48  ;;  %v2269_v48 = vld [vmem:[#allocation8 + $0xc8] ss:$16 sps:$4 sm:$0xff]  }
 0x1a7   : > { %1077 = vmatprep.subr.bf16.mxu0 %v2169_v50  ;;  %v2272_v50 = vld [vmem:[#allocation8 + $0xe8] ss:$16 sps:$4 sm:$0xff]  }
 0x1aa   : > { %1078 = vmatpush1.bf16.msra.mxu0 %v2167_v51  ;;  %v2277_v51 = vld [vmem:[#allocation8 + $0x10c] ss:$16 sps:$4 sm:$0xff]  }
 0x1ab   : > { %1079 = vmatprep.subr.bf16.mxu0 %v2172_v52  ;;  %v2275_v52 = vld [vmem:[#allocation8 + $0x108] ss:$16 sps:$4 sm:$0xff]  }
 0x1ae   : > { %1080 = vmatpush1.bf16.msra.mxu0 %v2170_v53  ;;  %v2280_v53 = vld [vmem:[#allocation8 + $0x12c] ss:$16 sps:$4 sm:$0xff]  }
 0x1af   : > { %1081 = vmatprep.subr.bf16.mxu0 %v2175_v54  ;;  %v2278_v54 = vld [vmem:[#allocation8 + $0x128] ss:$16 sps:$4 sm:$0xff]  }
 0x1b2   : > { %1082 = vmatpush1.bf16.msra.mxu0 %v2173_v55  ;;  %v2283_v55 = vld [vmem:[#allocation8 + $0x14c] ss:$16 sps:$4 sm:$0xff]  }
 0x1b3   : > { %1083 = vmatprep.subr.bf16.mxu0 %v2178_v56  ;;  %v2281_v56 = vld [vmem:[#allocation8 + $0x148] ss:$16 sps:$4 sm:$0xff]  }
 0x1b6   : > { %1084 = vmatpush1.bf16.msra.mxu0 %v2176_v57  ;;  %v2286_v57 = vld [vmem:[#allocation8 + $0x16c] ss:$16 sps:$4 sm:$0xff]  }
 0x1b7   : > { %1085 = vmatprep.subr.bf16.mxu0 %v2181_v58  ;;  %v2284_v58 = vld [vmem:[#allocation8 + $0x168] ss:$16 sps:$4 sm:$0xff]  }
 0x1ba   : > { %1086 = vmatpush1.bf16.msra.mxu0 %v2179_v59  ;;  %v2289_v59 = vld [vmem:[#allocation8 + $0x18c] ss:$16 sps:$4 sm:$0xff]  }
 0x1bb   : > { %1087 = vmatprep.subr.bf16.mxu0 %v2184_v60  ;;  %v2287_v60 = vld [vmem:[#allocation8 + $0x188] ss:$16 sps:$4 sm:$0xff]  }
 0x1be   : > { %1088 = vmatpush1.bf16.msra.mxu0 %v2182_v61  ;;  %v2292_v61 = vld [vmem:[#allocation8 + $0x1ac] ss:$16 sps:$4 sm:$0xff]  }
 0x1bf   : > { %1089 = vmatprep.subr.bf16.mxu0 %v2187_v62  ;;  %v2290_v62 = vld [vmem:[#allocation8 + $0x1a8] ss:$16 sps:$4 sm:$0xff]  }
 0x1c2   : > { %1090 = vmatpush1.bf16.msra.mxu0 %v2185_v63  ;;  %v2295_v63 = vld [vmem:[#allocation8 + $0x1cc] ss:$16 sps:$4 sm:$0xff]  }
 0x1c3   : > { %1091 = vmatprep.subr.bf16.mxu0 %v2190_v0  ;;  %v2293_v0 = vld [vmem:[#allocation8 + $0x1c8] ss:$16 sps:$4 sm:$0xff]  }
 0x1c6   : > { %1092 = vmatpush1.bf16.msra.mxu0 %v2188_v1  ;;  %v2298_v1 = vld [vmem:[#allocation8 + $0x1ec] ss:$16 sps:$4 sm:$0xff]  }
 0x1c7   : > { %1093 = vmatprep.subr.bf16.mxu0 %v2193_v2  ;;  %v2296_v2 = vld [vmem:[#allocation8 + $0x1e8] ss:$16 sps:$4 sm:$0xff]  }
 0x1ca   : > { %1094 = vmatpush1.bf16.msra.mxu0 %v2191_v3  ;;  %v1182_v3 = vld [vmem:[%s2902_s5] sm:$0xf] }
 0x1cb   : > { %1095 = vmatprep.subr.bf16.mxu0 %v2196_v4  ;;  %v1187_v4 = vrot.slane %v1182_v3, %v698_v17 }
 0x1ce   : > { %1096 = vmatpush1.bf16.msra.mxu0 %v2194_v5  ;;  %v1191_v5 = vrot.slane %v1182_v3, %v702_v19  ;;  %v1194_v19 = vsub.s32 2, %v2822_v16 }
 0x1cf   : > { %1097 = vmatprep.subr.bf16.mxu0 %v2199_v6 }
 0x1d2   : > { %1098 = vmatpush1.bf16.msra.mxu0 %v2197_v7 }
 0x1d3   : > { %1099 = vmatprep.subr.bf16.mxu0 %v2202_v8 }
 0x1d6   : > { %1100 = vmatpush1.bf16.msra.mxu0 %v2200_v9 }
 0x1d9   : > { %1102 = vmatmul.mubr.bf16.vlgmr.msra.gmra.mrb[4].mxu0 %v628_v46  ;;  %v2266_v46 = vld [vmem:[#allocation8 + $0xa8] ss:$16 sps:$4 sm:$0xff]  }
 0x2ac   : > { %v1103_v22 = vpop.f32.mrb[4].mxu0 }
 0x2ad   : > { %v1969_v23 = vadd.f32 %v1103_v22, %v699_v20  ;;  %v1105_v24 = vpop.f32.mrb[5].mxu0  ;;  %v1198_v22 = vsub.s32 3, %v2822_v16 }
 0x2ae   : > { %v1970_v25 = vadd.f32 %v1105_v24, %v703_v21  ;;  %v1107_v26 = vpop.f32.mrb[6].mxu0 }
 0x2af   : > { %v1971_v27 = vadd.f32 %v1107_v26, %v699_v20  ;;  %v1109_v28 = vpop.f32.mrb[7].mxu0  ;;  %v1112_v30 = vmax.f32 %v1969_v23, 0.0  ;;  %v1195_v23 = vrot.slane %v1182_v3, %v1194_v19  ;;  %v1199_v24 = vrot.slane %v1182_v3, %v1198_v22 }
 0x2b0   : > { %v1972_v29 = vadd.f32 %v1109_v28, %v703_v21  ;;  %v1113_v32 = vmax.f32 %v1970_v25, 0.0 }
 0x2b1   : > { %v1114_v31 = vmax.f32 %v1971_v27, 0.0 }
 0x2b2   : > { %v1115_v33 = vmax.f32 %v1972_v29, 0.0 }
 0x2b3   : > { %v2833_v34 = vpack.c.bf16 %v1114_v31, %v1112_v30 }
 0x2b4   : > { %v1117_v35 = vpack.c.bf16 %v1115_v33, %v1113_v32 }
 0x2b6   : > { %1556 = vmatprep.mubr.bf16.mxu1 %v1117_v35 }
 0x2b7   : > { %1557 = vmatmul.mubr.bf16.vlgmr.msra.gmra.mrb[4].mxu1 %v2833_v34 }
 0x2b8   : > { %1568 = vmatpush1.bf16.msra.mxu1 %v2251_v36  ;;  %1599 = vmatprep.mubr.bf16.mxu1 %v1117_v35 }
 0x2b9   : > { %1569 = vmatprep.subr.bf16.mxu1 %v2256_v37 }
 0x2bc   : > { %1570 = vmatpush1.bf16.msra.mxu1 %v2254_v38 }
 0x2bd   : > { %1571 = vmatprep.subr.bf16.mxu1 %v2259_v39 }
 0x2c0   : > { %1572 = vmatpush1.bf16.msra.mxu1 %v2257_v40 }
 0x2c1   : > { %1573 = vmatprep.subr.bf16.mxu1 %v2262_v41 }
 0x2c4   : > { %1574 = vmatpush1.bf16.msra.mxu1 %v2260_v42 }
 0x2c5   : > { %1575 = vmatprep.subr.bf16.mxu1 %v2265_v43 }
 0x2c8   : > { %1576 = vmatpush1.bf16.msra.mxu1 %v2263_v44 }
 0x2c9   : > { %1577 = vmatprep.subr.bf16.mxu1 %v2268_v45 }
 0x2cc   : > { %1578 = vmatpush1.bf16.msra.mxu1 %v2266_v46 }
 0x2cd   : > { %1579 = vmatprep.subr.bf16.mxu1 %v2271_v47 }
 0x2d0   : > { %1580 = vmatpush1.bf16.msra.mxu1 %v2269_v48 }
 0x2d1   : > { %1581 = vmatprep.subr.bf16.mxu1 %v2274_v49 }
 0x2d4   : > { %1582 = vmatpush1.bf16.msra.mxu1 %v2272_v50 }
 0x2d5   : > { %1583 = vmatprep.subr.bf16.mxu1 %v2277_v51 }
 0x2d8   : > { %1584 = vmatpush1.bf16.msra.mxu1 %v2275_v52 }
 0x2d9   : > { %1585 = vmatprep.subr.bf16.mxu1 %v2280_v53 }
 0x2dc   : > { %1586 = vmatpush1.bf16.msra.mxu1 %v2278_v54 }
 0x2dd   : > { %1587 = vmatprep.subr.bf16.mxu1 %v2283_v55 }
 0x2e0   : > { %1588 = vmatpush1.bf16.msra.mxu1 %v2281_v56 }
 0x2e1   : > { %1589 = vmatprep.subr.bf16.mxu1 %v2286_v57 }
 0x2e4   : > { %1590 = vmatpush1.bf16.msra.mxu1 %v2284_v58 }
 0x2e5   : > { %1591 = vmatprep.subr.bf16.mxu1 %v2289_v59 }
 0x2e8   : > { %1592 = vmatpush1.bf16.msra.mxu1 %v2287_v60 }
 0x2e9   : > { %1593 = vmatprep.subr.bf16.mxu1 %v2292_v61 }
 0x2ec   : > { %1594 = vmatpush1.bf16.msra.mxu1 %v2290_v62 }
 0x2ed   : > { %1595 = vmatprep.subr.bf16.mxu1 %v2295_v63 }
 0x2f0   : > { %1596 = vmatpush1.bf16.msra.mxu1 %v2293_v0 }
 0x2f1   : > { %1597 = vmatprep.subr.bf16.mxu1 %v2298_v1 }
 0x2f4   : > { %1598 = vmatpush1.bf16.msra.mxu1 %v2296_v2 }
 0x2f7   : > { %1600 = vmatmul.mubr.bf16.vlgmr.msra.gmra.mrb[8].mxu1 %v2833_v34 }
 0x38a   : > { %v1558_v6 = vpop.f32.mrb[4].mxu1 }
 0x38b   : > { %v1559_v7 = vadd.f32 %v1558_v6, %v1187_v4  ;;  %v1560_v8 = vpop.f32.mrb[5].mxu1 }
 0x38c   : > { %v1561_v9 = vadd.f32 %v1560_v8, %v1191_v5  ;;  %v1562_v10 = vpop.f32.mrb[6].mxu1 }
 0x38d   : > { %v1610_v11 = vmax.f32 %v1559_v7, 0.0  ;;  %v1563_v12 = vadd.f32 %v1562_v10, %v1187_v4  ;;  %v1564_v13 = vpop.f32.mrb[7].mxu1 }
 0x38e   : > { %v1611_v14 = vmax.f32 %v1561_v9, 0.0  ;;  %v1565_v15 = vadd.f32 %v1564_v13, %v1191_v5 }
 0x38f   : > { %v1614_v18 = vmax.f32 %v1563_v12, 0.0 }
 0x390   : > { %v1964_v20 = vpack.c.bf16 %v1611_v14, %v1610_v11  ;;  %v1615_v21 = vmax.f32 %v1565_v15, 0.0 }
 0x392   : > { %1642 = vst [vmem:[%s338_s2] sm:$0xff] %v1964_v20  ;;  %v1966_v17 = vpack.c.bf16 %v1615_v21, %v1614_v18 }
 0x394   : > { %1644 = vst [vmem:[%s338_s2 + $0x10] sm:$0xff] %v1966_v17 }
 0x3ca   : > { %v1601_v25 = vpop.f32.mrb[8].mxu1 }
 0x3cb   : > { %v1602_v26 = vadd.f32 %v1601_v25, %v1195_v23  ;;  %v1603_v27 = vpop.f32.mrb[9].mxu1 }
 0x3cc   : > { %v1604_v28 = vadd.f32 %v1603_v27, %v1199_v24  ;;  %v1605_v29 = vpop.f32.mrb[10].mxu1 }
 0x3cd   : > { %v1612_v30 = vmax.f32 %v1602_v26, 0.0  ;;  %v1606_v31 = vadd.f32 %v1605_v29, %v1195_v23  ;;  %v1607_v32 = vpop.f32.mrb[11].mxu1 }
 0x3ce   : > { %v1613_v33 = vmax.f32 %v1604_v28, 0.0  ;;  %v1608_v34 = vadd.f32 %v1607_v32, %v1199_v24 }
 0x3cf   : > { %v1616_v35 = vmax.f32 %v1606_v31, 0.0 }
 0x3d0   : > { %v1965_v16 = vpack.c.bf16 %v1613_v33, %v1612_v30  ;;  %v1617_v36 = vmax.f32 %v1608_v34, 0.0 }
 0x3d2   : > { %1643 = vst [vmem:[%s338_s2 + $0x8] sm:$0xff] %v1965_v16  ;;  %v1967_v37 = vpack.c.bf16 %v1617_v36, %v1616_v35 }
 0x3d4   : > { %1645 = vst [vmem:[%s338_s2 + $0x18] sm:$0xff] %v1967_v37 }
 0x3d5   : > { %2428 = shalt.err (!%p2425_p5)
}
 0x3d6   : > { %s2429_s4 = scalar_lea.hbm %s2853_s10, 512  ;;  %s2433_s27 = scalar_lea.hbm %s2903_s6, 1024 }
 0x3d7   : > { %p2430_p9 = scmp.ne.s32.totalorder %s2853_s10, %s2429_s4  ;;  %p2434_p11 = scmp.lt.u32.totalorder %s2853_s10, %s2903_s6 }
 0x3d8   : > { %p2435_p1 = scmp.lt.u32.totalorder %s2433_s27, %s2429_s4  ;;  %p2437_p2 = scmp.lt.u32.totalorder %s2429_s4, %s2853_s10 }
 0x3d9   : > { %p2431_p0 = pnand %p2430_p9, %p2931_p13 }
 0x3da   : > { %p2436_p12 = por %p2435_p1, %p2434_p11 }
 0x3db   : > { %p2432_p8 = pneg %p2431_p0 }
 0x3dc   : > { %p2438_p6 = por %p2437_p2, %p2436_p12 }
 0x3de   : > { %p2439_p10 = pnand %p2438_p6, %p2432_p8 }
 0x3e0   : > { %2442 = shalt.err (!%p2439_p10)
}
 0x3e1   : > { %s2507_s9 = smov 256   ;;  %s2508_s17 = smov 16  }
 0x3e2   : > { %1989 = dma.vmem_to_hbm [thread:$0]  (%p2931_p13), %s2848_s30, 512, %s2853_s10, %s1647_s18, %s2507_s9, %s2507_s9, %s2508_s17  }
 0x3e3 PF: > { %s1675_s2 = sand.u32 1, %s2481_s21   ;;  %p2932_p4 = scmp.ne.s32.totalorder %s2913_s28, 0 }
 0x3e4   : > { %p2933_p7 = scmp.ge.s32.totalorder %s2493_s24, 2  ;;  %s1676_s14 = scalar_lea.sflag [#allocation4], %s1675_s2 }
 0x3e6   : > { %p2006_p3 = pnand %p2933_p7, %p2932_p4 }
 0x3e8   : > { %2476 = dma.done.wait (!%p2006_p3), %s1676_s14, 512  }
 0x3e9   : > { %2478 = vsyncadd (!%p2006_p3), %s1676_s14, 4294966784  ;;  %s2934_s7 = sld [smem:[#allocation16_spill]]  ;;  %p23_p5 = scmp.ge.s32.totalorder %s2657_s26, 4  }
 0x3ea   : > { %s2935_s21 = smov %s2485_s22  ;;  %s2936_s22 = smov %s2489_s23 }
 0x3eb   : > { %s2938_s24 = smov %s2657_s26  ;;  %25 = sbr.rel (!%p23_p5) target bundleno = 12 (0xc), region = 110 }
 0x3ef   : > { %s2937_s23 = smov %s2934_s7 }
 0x3f2   :  { %1681 = vsyncpa [#allocation3], 1 }
 0x3f3   :  { %1683 = vsyncpa [#allocation3 + $0x1], 1 }
 0x3f4   :  { %1684 = vsyncpa [#allocation6], 1 }
 0x3f5   :  { %1686 = vsyncpa [#allocation6 + $0x1], 1 }
 0x3f6   :  { %1687 = vsyncpa [#allocation9], 1 }
 0x3f7   :  { %1688 = vsyncpa [#allocation4], 1 }
 0x3f8   :  { %1690 = vsyncpa [#allocation4 + $0x1], 1 }

</bundles_post_ra>
